<compile_context>
chip_gen: v7x
topology: tpu7x:2x2x1
jax: 0.10.0
libtpu: 0.0.40
codegen_flags: <defaults>
</compile_context>

<pallas_src>
import jax
import jax.numpy as jnp
from jax.experimental import pallas as pl
from jax.experimental.pallas import tpu as pltpu

# Older JAX releases exposed this class under a different name.
_CompilerParams = getattr(pltpu, "CompilerParams", None) or getattr(
    pltpu, "TPUCompilerParams"
)


def _parallel1d():
    return _CompilerParams(dimension_semantics=("parallel",))


# ---------------------------------------------------------------------------
# Fused conv + bias + ReLU + 2x2 max-pool kernel (lane-dense output)
# ---------------------------------------------------------------------------
def _conv_relu_pool_kernel(p_ref, w_ref, b_ref, o_ref):
    # p_ref: (4, K, tq) bf16  -- im2col columns for the 4 pool offsets
    # w_ref: (OC, K)  bf16    -- PyTorch weight.reshape(OC, -1)
    # b_ref: (OC, 1)  f32
    # o_ref: (OC, tq) bf16    -- pooled activations, tq columns on lanes
    w = w_ref[...]
    a0 = jnp.dot(w, p_ref[0], preferred_element_type=jnp.float32)
    a1 = jnp.dot(w, p_ref[1], preferred_element_type=jnp.float32)
    a2 = jnp.dot(w, p_ref[2], preferred_element_type=jnp.float32)
    a3 = jnp.dot(w, p_ref[3], preferred_element_type=jnp.float32)
    # maxpool(relu(conv + b)) == relu(max_i(conv_i) + b)  (relu monotone, shared b)
    z = jnp.maximum(jnp.maximum(a0, a1), jnp.maximum(a2, a3)) + b_ref[...]
    o_ref[...] = jnp.maximum(z, 0.0).astype(o_ref.dtype)


def conv_relu_pool(p, wm, b, *, tq_max=1024):
    """p:(4,K,Q) bf16, wm:(OC,K) bf16, b:(OC,1) f32 -> (OC,Q) bf16."""
    _, K, Q = p.shape
    OC = wm.shape[0]
    if Q <= tq_max:
        tq, steps = Q, 1                      # single full block (small batch)
    else:
        tq, steps = tq_max, pl.cdiv(Q, tq_max)  # lane-aligned tiles, edge padded
    return pl.pallas_call(
        _conv_relu_pool_kernel,
        out_shape=jax.ShapeDtypeStruct((OC, Q), jnp.bfloat16),
        grid=(steps,),
        in_specs=[
            pl.BlockSpec((4, K, tq), lambda j: (0, 0, j)),
            pl.BlockSpec((OC, K), lambda j: (0, 0)),
            pl.BlockSpec((OC, 1), lambda j: (0, 0)),
        ],
        out_specs=pl.BlockSpec((OC, tq), lambda j: (0, j)),
        compiler_params=_parallel1d(),
    )(p, wm, b)


def build_pool_patches(x_cnhw, K):
    """JAX-level im2col in pool-grouped layout.

    x_cnhw: (C, N, H, W) -> (4, C*K*K, N*POH*POW) bf16
    rows ordered (c, kh, kw) to match PyTorch weight.reshape(OC, -1);
    leading axis = 2x2 pool offset (ph, pw); columns ordered (n, poh, pow).
    """
    C, N, H, W = x_cnhw.shape
    OH, OW = H - K + 1, W - K + 1
    POH, POW = OH // 2, OW // 2
    parts = [x_cnhw[:, :, kh:kh + OH, kw:kw + OW]
             for kh in range(K) for kw in range(K)]        # each (C, N, OH, OW)
    p = jnp.stack(parts, axis=1)                           # (C, K*K, N, OH, OW)
    p = p.reshape(C * K * K, N, POH, 2, POW, 2)
    p = p.transpose(3, 5, 0, 1, 2, 4)                      # (2, 2, CKK, N, POH, POW)
    return p.reshape(4, C * K * K, N * POH * POW).astype(jnp.bfloat16)


# ---------------------------------------------------------------------------
# Fused fc1 + ReLU + fc2 + ReLU + fc3 kernel (weights resident in VMEM)
# ---------------------------------------------------------------------------
def _fc_fused_kernel(x_ref, w1_ref, b1_ref, w2_ref, b2_ref, w3_ref, b3_ref, o_ref):
    h = jnp.dot(x_ref[...], w1_ref[...], preferred_element_type=jnp.float32)
    h = jnp.maximum(h + b1_ref[...], 0.0).astype(jnp.bfloat16)
    h = jnp.dot(h, w2_ref[...], preferred_element_type=jnp.float32)
    h = jnp.maximum(h + b2_ref[...], 0.0).astype(jnp.bfloat16)
    o = jnp.dot(h, w3_ref[...], preferred_element_type=jnp.float32) + b3_ref[...]
    o_ref[...] = o.astype(o_ref.dtype)


def fc_forward(x, w1, b1, w2, b2, w3, b3, *, tn_max=256):
    """x:(N,D) bf16; w*: (K,N) bf16 pre-transposed; b*: (1,N) f32 -> (N,10) f32."""
    N, D = x.shape
    n_out = w3.shape[1]
    if N <= tn_max:
        tn, steps = N, 1
    else:
        tn, steps = tn_max, pl.cdiv(N, tn_max)
    return pl.pallas_call(
        _fc_fused_kernel,
        out_shape=jax.ShapeDtypeStruct((N, n_out), jnp.float32),
        grid=(steps,),
        in_specs=[
            pl.BlockSpec((tn, D), lambda i: (i, 0)),
            pl.BlockSpec(w1.shape, lambda i: (0, 0)),
            pl.BlockSpec((1, w1.shape[1]), lambda i: (0, 0)),
            pl.BlockSpec(w2.shape, lambda i: (0, 0)),
            pl.BlockSpec((1, w2.shape[1]), lambda i: (0, 0)),
            pl.BlockSpec(w3.shape, lambda i: (0, 0)),
            pl.BlockSpec((1, w3.shape[1]), lambda i: (0, 0)),
        ],
        out_specs=pl.BlockSpec((tn, n_out), lambda i: (i, 0)),
        compiler_params=_parallel1d(),
    )(x, w1, b1, w2, b2, w3, b3)


# ---------------------------------------------------------------------------
# Parameters (deterministic, PyTorch-default-style uniform init)
# ---------------------------------------------------------------------------
def init_params(key):
    ks = jax.random.split(key, 10)

    def u(k, shape, fan_in):
        bound = 1.0 / float(fan_in) ** 0.5
        return jax.random.uniform(k, shape, jnp.float32, -bound, bound)

    return {
        "conv1_w": u(ks[0], (6, 3, 5, 5), 3 * 25),
        "conv1_b": u(ks[1], (6,), 3 * 25),
        "conv2_w": u(ks[2], (16, 6, 5, 5), 6 * 25),
        "conv2_b": u(ks[3], (16,), 6 * 25),
        "fc1_w": u(ks[4], (128, 16 * 4 * 4), 16 * 4 * 4),
        "fc1_b": u(ks[5], (128,), 16 * 4 * 4),
        "fc2_w": u(ks[6], (64, 128), 128),
        "fc2_b": u(ks[7], (64,), 128),
        "fc3_w": u(ks[8], (10, 64), 64),
        "fc3_b": u(ks[9], (10,), 64),
    }


def prepare_params(params):
    """One-time conversion to kernel-ready layout (flattened / pre-transposed, bf16)."""
    bf = jnp.bfloat16
    return {
        "conv1_wm": params["conv1_w"].reshape(6, -1).astype(bf),       # (6, 75)
        "conv1_b": params["conv1_b"].reshape(-1, 1).astype(jnp.float32),
        "conv2_wm": params["conv2_w"].reshape(16, -1).astype(bf),      # (16, 150)
        "conv2_b": params["conv2_b"].reshape(-1, 1).astype(jnp.float32),
        "fc1_wt": params["fc1_w"].T.astype(bf),                        # (256, 128)
        "fc1_b": params["fc1_b"].reshape(1, -1).astype(jnp.float32),
        "fc2_wt": params["fc2_w"].T.astype(bf),                        # (128, 64)
        "fc2_b": params["fc2_b"].reshape(1, -1).astype(jnp.float32),
        "fc3_wt": params["fc3_w"].T.astype(bf),                        # (64, 10)
        "fc3_b": params["fc3_b"].reshape(1, -1).astype(jnp.float32),
    }


# ---------------------------------------------------------------------------
# Forward pass (mirrors MnistmClassifier.forward)
# ---------------------------------------------------------------------------
def mnistm_classifier_forward(kp, x):
    # x: (N, 3, 28, 28) float32
    N = x.shape[0]
    xc = jnp.transpose(x.astype(jnp.bfloat16), (1, 0, 2, 3))     # (3, N, 28, 28)

    p1 = build_pool_patches(xc, 5)                               # (4, 75, N*144)
    h1 = conv_relu_pool(p1, kp["conv1_wm"], kp["conv1_b"])       # (6, N*144)
    h1 = h1.reshape(6, N, 12, 12)                                # CNHW for layer 2

    p2 = build_pool_patches(h1, 5)                               # (4, 150, N*16)
    h2 = conv_relu_pool(p2, kp["conv2_wm"], kp["conv2_b"])       # (16, N*16)

    # torch.flatten(x, 1) on NCHW -> feature order (c, h, w)
    feat = h2.reshape(16, N, 4, 4).transpose(1, 0, 2, 3).reshape(N, 256)

    return fc_forward(feat, kp["fc1_wt"], kp["fc1_b"],
                      kp["fc2_wt"], kp["fc2_b"],
                      kp["fc3_wt"], kp["fc3_b"])                 # (N, 10) f32


if __name__ == "__main__":
    key = jax.random.PRNGKey(0)
    pkey, xkey = jax.random.split(key)
    params = init_params(pkey)
    kparams = prepare_params(params)   # one-time weight repack (outside jit)
    # MNIST-M input: 3x28x28 (spatial size fixed by fc1 = 16*4*4); small batch.
    x = jax.random.normal(xkey, (2, 3, 28, 28), jnp.float32)
    out = jax.jit(mnistm_classifier_forward)(kparams, x)
    out = jax.block_until_ready(out)
    assert out.shape == (2, 10) and out.dtype == jnp.float32
    print("KERNEL_OK")
</pallas_src>

<mosaic_0001>
module attributes {stable_mosaic.version = 11 : i64} {
  func.func @_conv_relu_pool_kernel(%arg0: i32, %arg1: memref<4x75x288xbf16, #tpu.memory_space<vmem>>, %arg2: memref<6x75xbf16, #tpu.memory_space<vmem>>, %arg3: memref<6x1xf32, #tpu.memory_space<vmem>>, %arg4: memref<6x288xbf16, #tpu.memory_space<vmem>>) attributes {dimension_semantics = [#tpu.dimension_semantics<parallel>], iteration_bounds = array<i64: 1>, scalar_prefetch = 0 : i64, scratch_operands = 0 : i64, tpu.core_type = #tpu.core_type<tc>, window_params = [{transform_indices = @transform_0, window_bounds = array<i64: 4, 75, 288>}, {pipeline_mode = #tpu.pipeline_mode<synchronous>, transform_indices = @transform_1, window_bounds = array<i64: 6, 75>}, {pipeline_mode = #tpu.pipeline_mode<synchronous>, transform_indices = @transform_2, window_bounds = array<i64: 6, 1>}, {transform_indices = @transform_3, window_bounds = array<i64: 6, 288>}]} {
    %c0 = arith.constant 0 : index
    %c0_0 = arith.constant 0 : index
    %0 = vector.load %arg2[%c0, %c0_0] : memref<6x75xbf16, #tpu.memory_space<vmem>>, vector<6x75xbf16>
    %c0_1 = arith.constant 0 : index
    %c0_2 = arith.constant 0 : index
    %c0_3 = arith.constant 0 : index
    %1 = vector.load %arg1[%c0_1, %c0_2, %c0_3] : memref<4x75x288xbf16, #tpu.memory_space<vmem>>, vector<1x75x288xbf16>
    %2 = vector.shape_cast %1 : vector<1x75x288xbf16> to vector<75x288xbf16>
    %cst = arith.constant dense<0.000000e+00> : vector<6x288xf32>
    %3 = tpu.matmul %0, %2, %cst {dimension_numbers = #tpu.dot_dimension_numbers<[1], [0], [0], [1], [0, 0, 1, 1], [], []>} : vector<6x75xbf16>, vector<75x288xbf16>, vector<6x288xf32> -> vector<6x288xf32>
    %c1 = arith.constant 1 : index
    %c0_4 = arith.constant 0 : index
    %c0_5 = arith.constant 0 : index
    %4 = vector.load %arg1[%c1, %c0_4, %c0_5] : memref<4x75x288xbf16, #tpu.memory_space<vmem>>, vector<1x75x288xbf16>
    %5 = vector.shape_cast %4 : vector<1x75x288xbf16> to vector<75x288xbf16>
    %cst_6 = arith.constant dense<0.000000e+00> : vector<6x288xf32>
    %6 = tpu.matmul %0, %5, %cst_6 {dimension_numbers = #tpu.dot_dimension_numbers<[1], [0], [0], [1], [0, 0, 1, 1], [], []>} : vector<6x75xbf16>, vector<75x288xbf16>, vector<6x288xf32> -> vector<6x288xf32>
    %c2 = arith.constant 2 : index
    %c0_7 = arith.constant 0 : index
    %c0_8 = arith.constant 0 : index
    %7 = vector.load %arg1[%c2, %c0_7, %c0_8] : memref<4x75x288xbf16, #tpu.memory_space<vmem>>, vector<1x75x288xbf16>
    %8 = vector.shape_cast %7 : vector<1x75x288xbf16> to vector<75x288xbf16>
    %cst_9 = arith.constant dense<0.000000e+00> : vector<6x288xf32>
    %9 = tpu.matmul %0, %8, %cst_9 {dimension_numbers = #tpu.dot_dimension_numbers<[1], [0], [0], [1], [0, 0, 1, 1], [], []>} : vector<6x75xbf16>, vector<75x288xbf16>, vector<6x288xf32> -> vector<6x288xf32>
    %c3 = arith.constant 3 : index
    %c0_10 = arith.constant 0 : index
    %c0_11 = arith.constant 0 : index
    %10 = vector.load %arg1[%c3, %c0_10, %c0_11] : memref<4x75x288xbf16, #tpu.memory_space<vmem>>, vector<1x75x288xbf16>
    %11 = vector.shape_cast %10 : vector<1x75x288xbf16> to vector<75x288xbf16>
    %cst_12 = arith.constant dense<0.000000e+00> : vector<6x288xf32>
    %12 = tpu.matmul %0, %11, %cst_12 {dimension_numbers = #tpu.dot_dimension_numbers<[1], [0], [0], [1], [0, 0, 1, 1], [], []>} : vector<6x75xbf16>, vector<75x288xbf16>, vector<6x288xf32> -> vector<6x288xf32>
    %13 = arith.maximumf %3, %6 : vector<6x288xf32>
    %14 = arith.maximumf %9, %12 : vector<6x288xf32>
    %15 = arith.maximumf %13, %14 : vector<6x288xf32>
    %c0_13 = arith.constant 0 : index
    %c0_14 = arith.constant 0 : index
    %16 = vector.load %arg3[%c0_13, %c0_14] : memref<6x1xf32, #tpu.memory_space<vmem>>, vector<6x1xf32>
    %17 = vector.broadcast %16 : vector<6x1xf32> to vector<6x288xf32>
    %18 = arith.addf %15, %17 : vector<6x288xf32>
    %cst_15 = arith.constant 0.000000e+00 : f32
    %19 = vector.broadcast %cst_15 : f32 to vector<6x288xf32>
    %20 = arith.maximumf %18, %19 : vector<6x288xf32>
    %21 = arith.truncf %20 : vector<6x288xf32> to vector<6x288xbf16>
    %c0_16 = arith.constant 0 : index
    %c0_17 = arith.constant 0 : index
    %22 = vector.load %arg4[%c0_16, %c0_17] : memref<6x288xbf16, #tpu.memory_space<vmem>>, vector<6x288xbf16>
    tpu.vector_store %arg4[%c0_16, %c0_17], %21 {strides = array<i32>} : memref<6x288xbf16, #tpu.memory_space<vmem>>, vector<6x288xbf16>,
    return
  }
  func.func @transform_0(%arg0: i32) -> (i32, i32, i32) {
    %c0_i32 = arith.constant 0 : i32
    %c0_i32_0 = arith.constant 0 : i32
    %c0_i32_1 = arith.constant 0 : i32
    return %c0_i32, %c0_i32_0, %arg0 : i32, i32, i32
  }
  func.func @transform_1(%arg0: i32) -> (i32, i32) {
    %c0_i32 = arith.constant 0 : i32
    %c0_i32_0 = arith.constant 0 : i32
    %c0_i32_1 = arith.constant 0 : i32
    return %c0_i32, %c0_i32_0 : i32, i32
  }
  func.func @transform_2(%arg0: i32) -> (i32, i32) {
    %c0_i32 = arith.constant 0 : i32
    %c0_i32_0 = arith.constant 0 : i32
    %c0_i32_1 = arith.constant 0 : i32
    return %c0_i32, %c0_i32_0 : i32, i32
  }
  func.func @transform_3(%arg0: i32) -> (i32, i32) {
    %c0_i32 = arith.constant 0 : i32
    %c0_i32_0 = arith.constant 0 : i32
    return %c0_i32, %arg0 : i32, i32
  }
}

module attributes {stable_mosaic.version = 11 : i64} {
  func.func @_conv_relu_pool_kernel(%arg0: i32, %arg1: memref<4x150x32xbf16, #tpu.memory_space<vmem>>, %arg2: memref<16x150xbf16, #tpu.memory_space<vmem>>, %arg3: memref<16x1xf32, #tpu.memory_space<vmem>>, %arg4: memref<16x32xbf16, #tpu.memory_space<vmem>>) attributes {dimension_semantics = [#tpu.dimension_semantics<parallel>], iteration_bounds = array<i64: 1>, scalar_prefetch = 0 : i64, scratch_operands = 0 : i64, tpu.core_type = #tpu.core_type<tc>, window_params = [{transform_indices = @transform_0, window_bounds = array<i64: 4, 150, 32>}, {pipeline_mode = #tpu.pipeline_mode<synchronous>, transform_indices = @transform_1, window_bounds = array<i64: 16, 150>}, {pipeline_mode = #tpu.pipeline_mode<synchronous>, transform_indices = @transform_2, window_bounds = array<i64: 16, 1>}, {transform_indices = @transform_3, window_bounds = array<i64: 16, 32>}]} {
    %c0 = arith.constant 0 : index
    %c0_0 = arith.constant 0 : index
    %0 = vector.load %arg2[%c0, %c0_0] : memref<16x150xbf16, #tpu.memory_space<vmem>>, vector<16x150xbf16>
    %c0_1 = arith.constant 0 : index
    %c0_2 = arith.constant 0 : index
    %c0_3 = arith.constant 0 : index
    %1 = vector.load %arg1[%c0_1, %c0_2, %c0_3] : memref<4x150x32xbf16, #tpu.memory_space<vmem>>, vector<1x150x32xbf16>
    %2 = vector.shape_cast %1 : vector<1x150x32xbf16> to vector<150x32xbf16>
    %cst = arith.constant dense<0.000000e+00> : vector<16x32xf32>
    %3 = tpu.matmul %0, %2, %cst {dimension_numbers = #tpu.dot_dimension_numbers<[1], [0], [0], [1], [0, 0, 1, 1], [], []>} : vector<16x150xbf16>, vector<150x32xbf16>, vector<16x32xf32> -> vector<16x32xf32>
    %c1 = arith.constant 1 : index
    %c0_4 = arith.constant 0 : index
    %c0_5 = arith.constant 0 : index
    %4 = vector.load %arg1[%c1, %c0_4, %c0_5] : memref<4x150x32xbf16, #tpu.memory_space<vmem>>, vector<1x150x32xbf16>
    %5 = vector.shape_cast %4 : vector<1x150x32xbf16> to vector<150x32xbf16>
    %cst_6 = arith.constant dense<0.000000e+00> : vector<16x32xf32>
    %6 = tpu.matmul %0, %5, %cst_6 {dimension_numbers = #tpu.dot_dimension_numbers<[1], [0], [0], [1], [0, 0, 1, 1], [], []>} : vector<16x150xbf16>, vector<150x32xbf16>, vector<16x32xf32> -> vector<16x32xf32>
    %c2 = arith.constant 2 : index
    %c0_7 = arith.constant 0 : index
    %c0_8 = arith.constant 0 : index
    %7 = vector.load %arg1[%c2, %c0_7, %c0_8] : memref<4x150x32xbf16, #tpu.memory_space<vmem>>, vector<1x150x32xbf16>
    %8 = vector.shape_cast %7 : vector<1x150x32xbf16> to vector<150x32xbf16>
    %cst_9 = arith.constant dense<0.000000e+00> : vector<16x32xf32>
    %9 = tpu.matmul %0, %8, %cst_9 {dimension_numbers = #tpu.dot_dimension_numbers<[1], [0], [0], [1], [0, 0, 1, 1], [], []>} : vector<16x150xbf16>, vector<150x32xbf16>, vector<16x32xf32> -> vector<16x32xf32>
    %c3 = arith.constant 3 : index
    %c0_10 = arith.constant 0 : index
    %c0_11 = arith.constant 0 : index
    %10 = vector.load %arg1[%c3, %c0_10, %c0_11] : memref<4x150x32xbf16, #tpu.memory_space<vmem>>, vector<1x150x32xbf16>
    %11 = vector.shape_cast %10 : vector<1x150x32xbf16> to vector<150x32xbf16>
    %cst_12 = arith.constant dense<0.000000e+00> : vector<16x32xf32>
    %12 = tpu.matmul %0, %11, %cst_12 {dimension_numbers = #tpu.dot_dimension_numbers<[1], [0], [0], [1], [0, 0, 1, 1], [], []>} : vector<16x150xbf16>, vector<150x32xbf16>, vector<16x32xf32> -> vector<16x32xf32>
    %13 = arith.maximumf %3, %6 : vector<16x32xf32>
    %14 = arith.maximumf %9, %12 : vector<16x32xf32>
    %15 = arith.maximumf %13, %14 : vector<16x32xf32>
    %c0_13 = arith.constant 0 : index
    %c0_14 = arith.constant 0 : index
    %16 = vector.load %arg3[%c0_13, %c0_14] : memref<16x1xf32, #tpu.memory_space<vmem>>, vector<16x1xf32>
    %17 = vector.broadcast %16 : vector<16x1xf32> to vector<16x32xf32>
    %18 = arith.addf %15, %17 : vector<16x32xf32>
    %cst_15 = arith.constant 0.000000e+00 : f32
    %19 = vector.broadcast %cst_15 : f32 to vector<16x32xf32>
    %20 = arith.maximumf %18, %19 : vector<16x32xf32>
    %21 = arith.truncf %20 : vector<16x32xf32> to vector<16x32xbf16>
    %c0_16 = arith.constant 0 : index
    %c0_17 = arith.constant 0 : index
    %22 = vector.load %arg4[%c0_16, %c0_17] : memref<16x32xbf16, #tpu.memory_space<vmem>>, vector<16x32xbf16>
    tpu.vector_store %arg4[%c0_16, %c0_17], %21 {strides = array<i32>} : memref<16x32xbf16, #tpu.memory_space<vmem>>, vector<16x32xbf16>,
    return
  }
  func.func @transform_0(%arg0: i32) -> (i32, i32, i32) {
    %c0_i32 = arith.constant 0 : i32
    %c0_i32_0 = arith.constant 0 : i32
    %c0_i32_1 = arith.constant 0 : i32
    return %c0_i32, %c0_i32_0, %arg0 : i32, i32, i32
  }
  func.func @transform_1(%arg0: i32) -> (i32, i32) {
    %c0_i32 = arith.constant 0 : i32
    %c0_i32_0 = arith.constant 0 : i32
    %c0_i32_1 = arith.constant 0 : i32
    return %c0_i32, %c0_i32_0 : i32, i32
  }
  func.func @transform_2(%arg0: i32) -> (i32, i32) {
    %c0_i32 = arith.constant 0 : i32
    %c0_i32_0 = arith.constant 0 : i32
    %c0_i32_1 = arith.constant 0 : i32
    return %c0_i32, %c0_i32_0 : i32, i32
  }
  func.func @transform_3(%arg0: i32) -> (i32, i32) {
    %c0_i32 = arith.constant 0 : i32
    %c0_i32_0 = arith.constant 0 : i32
    return %c0_i32, %arg0 : i32, i32
  }
}

module attributes {stable_mosaic.version = 11 : i64} {
  func.func @_fc_fused_kernel(%arg0: i32, %arg1: memref<2x256xbf16, #tpu.memory_space<vmem>>, %arg2: memref<256x128xbf16, #tpu.memory_space<vmem>>, %arg3: memref<1x128xf32, #tpu.memory_space<vmem>>, %arg4: memref<128x64xbf16, #tpu.memory_space<vmem>>, %arg5: memref<1x64xf32, #tpu.memory_space<vmem>>, %arg6: memref<64x10xbf16, #tpu.memory_space<vmem>>, %arg7: memref<1x10xf32, #tpu.memory_space<vmem>>, %arg8: memref<2x10xf32, #tpu.memory_space<vmem>>) attributes {dimension_semantics = [#tpu.dimension_semantics<parallel>], iteration_bounds = array<i64: 1>, scalar_prefetch = 0 : i64, scratch_operands = 0 : i64, tpu.core_type = #tpu.core_type<tc>, window_params = [{transform_indices = @transform_0, window_bounds = array<i64: 2, 256>}, {pipeline_mode = #tpu.pipeline_mode<synchronous>, transform_indices = @transform_1, window_bounds = array<i64: 256, 128>}, {pipeline_mode = #tpu.pipeline_mode<synchronous>, transform_indices = @transform_2, window_bounds = array<i64: 1, 128>}, {pipeline_mode = #tpu.pipeline_mode<synchronous>, transform_indices = @transform_3, window_bounds = array<i64: 128, 64>}, {pipeline_mode = #tpu.pipeline_mode<synchronous>, transform_indices = @transform_4, window_bounds = array<i64: 1, 64>}, {pipeline_mode = #tpu.pipeline_mode<synchronous>, transform_indices = @transform_5, window_bounds = array<i64: 64, 10>}, {pipeline_mode = #tpu.pipeline_mode<synchronous>, transform_indices = @transform_6, window_bounds = array<i64: 1, 10>}, {transform_indices = @transform_7, window_bounds = array<i64: 2, 10>}]} {
    %c0 = arith.constant 0 : index
    %c0_0 = arith.constant 0 : index
    %0 = vector.load %arg1[%c0, %c0_0] : memref<2x256xbf16, #tpu.memory_space<vmem>>, vector<2x256xbf16>
    %c0_1 = arith.constant 0 : index
    %c0_2 = arith.constant 0 : index
    %1 = vector.load %arg2[%c0_1, %c0_2] : memref<256x128xbf16, #tpu.memory_space<vmem>>, vector<256x128xbf16>
    %cst = arith.constant dense<0.000000e+00> : vector<2x128xf32>
    %2 = tpu.matmul %0, %1, %cst {dimension_numbers = #tpu.dot_dimension_numbers<[1], [0], [0], [1], [0, 0, 1, 1], [], []>} : vector<2x256xbf16>, vector<256x128xbf16>, vector<2x128xf32> -> vector<2x128xf32>
    %c0_3 = arith.constant 0 : index
    %c0_4 = arith.constant 0 : index
    %3 = vector.load %arg3[%c0_3, %c0_4] : memref<1x128xf32, #tpu.memory_space<vmem>>, vector<1x128xf32>
    %4 = vector.broadcast %3 : vector<1x128xf32> to vector<2x128xf32>
    %5 = arith.addf %2, %4 : vector<2x128xf32>
    %cst_5 = arith.constant 0.000000e+00 : f32
    %6 = vector.broadcast %cst_5 : f32 to vector<2x128xf32>
    %7 = arith.maximumf %5, %6 : vector<2x128xf32>
    %8 = arith.truncf %7 : vector<2x128xf32> to vector<2x128xbf16>
    %c0_6 = arith.constant 0 : index
    %c0_7 = arith.constant 0 : index
    %9 = vector.load %arg4[%c0_6, %c0_7] : memref<128x64xbf16, #tpu.memory_space<vmem>>, vector<128x64xbf16>
    %cst_8 = arith.constant dense<0.000000e+00> : vector<2x64xf32>
    %10 = tpu.matmul %8, %9, %cst_8 {dimension_numbers = #tpu.dot_dimension_numbers<[1], [0], [0], [1], [0, 0, 1, 1], [], []>} : vector<2x128xbf16>, vector<128x64xbf16>, vector<2x64xf32> -> vector<2x64xf32>
    %c0_9 = arith.constant 0 : index
    %c0_10 = arith.constant 0 : index
    %11 = vector.load %arg5[%c0_9, %c0_10] : memref<1x64xf32, #tpu.memory_space<vmem>>, vector<1x64xf32>
    %12 = vector.broadcast %11 : vector<1x64xf32> to vector<2x64xf32>
    %13 = arith.addf %10, %12 : vector<2x64xf32>
    %cst_11 = arith.constant 0.000000e+00 : f32
    %14 = vector.broadcast %cst_11 : f32 to vector<2x64xf32>
    %15 = arith.maximumf %13, %14 : vector<2x64xf32>
    %16 = arith.truncf %15 : vector<2x64xf32> to vector<2x64xbf16>
    %c0_12 = arith.constant 0 : index
    %c0_13 = arith.constant 0 : index
    %17 = vector.load %arg6[%c0_12, %c0_13] : memref<64x10xbf16, #tpu.memory_space<vmem>>, vector<64x10xbf16>
    %cst_14 = arith.constant dense<0.000000e+00> : vector<2x10xf32>
    %18 = tpu.matmul %16, %17, %cst_14 {dimension_numbers = #tpu.dot_dimension_numbers<[1], [0], [0], [1], [0, 0, 1, 1], [], []>} : vector<2x64xbf16>, vector<64x10xbf16>, vector<2x10xf32> -> vector<2x10xf32>
    %c0_15 = arith.constant 0 : index
    %c0_16 = arith.constant 0 : index
    %19 = vector.load %arg7[%c0_15, %c0_16] : memref<1x10xf32, #tpu.memory_space<vmem>>, vector<1x10xf32>
    %20 = vector.broadcast %19 : vector<1x10xf32> to vector<2x10xf32>
    %21 = arith.addf %18, %20 : vector<2x10xf32>
    %c0_17 = arith.constant 0 : index
    %c0_18 = arith.constant 0 : index
    %22 = vector.load %arg8[%c0_17, %c0_18] : memref<2x10xf32, #tpu.memory_space<vmem>>, vector<2x10xf32>
    tpu.vector_store %arg8[%c0_17, %c0_18], %21 {strides = array<i32>} : memref<2x10xf32, #tpu.memory_space<vmem>>, vector<2x10xf32>,
    return
  }
  func.func @transform_0(%arg0: i32) -> (i32, i32) {
    %c0_i32 = arith.constant 0 : i32
    %c0_i32_0 = arith.constant 0 : i32
    return %arg0, %c0_i32 : i32, i32
  }
  func.func @transform_1(%arg0: i32) -> (i32, i32) {
    %c0_i32 = arith.constant 0 : i32
    %c0_i32_0 = arith.constant 0 : i32
    %c0_i32_1 = arith.constant 0 : i32
    return %c0_i32, %c0_i32_0 : i32, i32
  }
  func.func @transform_2(%arg0: i32) -> (i32, i32) {
    %c0_i32 = arith.constant 0 : i32
    %c0_i32_0 = arith.constant 0 : i32
    %c0_i32_1 = arith.constant 0 : i32
    return %c0_i32, %c0_i32_0 : i32, i32
  }
  func.func @transform_3(%arg0: i32) -> (i32, i32) {
    %c0_i32 = arith.constant 0 : i32
    %c0_i32_0 = arith.constant 0 : i32
    %c0_i32_1 = arith.constant 0 : i32
    return %c0_i32, %c0_i32_0 : i32, i32
  }
  func.func @transform_4(%arg0: i32) -> (i32, i32) {
    %c0_i32 = arith.constant 0 : i32
    %c0_i32_0 = arith.constant 0 : i32
    %c0_i32_1 = arith.constant 0 : i32
    return %c0_i32, %c0_i32_0 : i32, i32
  }
  func.func @transform_5(%arg0: i32) -> (i32, i32) {
    %c0_i32 = arith.constant 0 : i32
    %c0_i32_0 = arith.constant 0 : i32
    %c0_i32_1 = arith.constant 0 : i32
    return %c0_i32, %c0_i32_0 : i32, i32
  }
  func.func @transform_6(%arg0: i32) -> (i32, i32) {
    %c0_i32 = arith.constant 0 : i32
    %c0_i32_0 = arith.constant 0 : i32
    %c0_i32_1 = arith.constant 0 : i32
    return %c0_i32, %c0_i32_0 : i32, i32
  }
  func.func @transform_7(%arg0: i32) -> (i32, i32) {
    %c0_i32 = arith.constant 0 : i32
    %c0_i32_0 = arith.constant 0 : i32
    return %arg0, %c0_i32 : i32, i32
  }
}

</mosaic_0001>

<bundles_post_ra>
// kernel: mnistm_classifier_forward.3
= control target key start
LH: loop header
LB: loop body
LE: loop exit
PB: predicated region body
PF: predicated region fallthrough
CT: control target
= control target key end

     0   :  { %v1113_v0 = vmov 0.0   ;;  %vm117_vm0 = vcmask 1044480   ;;  %vm1114_vm1 = vmmov 0   ;;  %v1115_v5 = vmov 0   ;;  %s1395_s0 = inlined_call_operand.vmem [shape: bf16[4,75,288], index: 0, kind: input, shape index: {}]   ;;  %s1396_s1 = inlined_call_operand.vmem [shape: bf16[6,75], index: 1, kind: input, shape index: {}]   ;;  %s1397_s2 = inlined_call_operand.vmem [shape: f32[6,1], index: 2, kind: input, shape index: {}]   ;;  %s1398_s3 = inlined_call_operand.vmem [shape: bf16[6,288], index: 3, kind: output, shape index: {}]  }
   0x1   :  { %972 = vmatprep.subr.bf16.mxu1 %v1113_v0  ;;  %v1033_v1 = vld [vmem:[%s1395_s0 + $0x4] ss:$12 sps:$4 sm:$0xff]   ;;  %v1035_v2 = vld [vmem:[%s1395_s0 + $0x8] ss:$12 sps:$4 sm:$0xff]   ;;  %982 = vmatprep.mubr.msk.bf16.mxu1 %vm1114_vm1, %v1113_v0  ;;  %v1036_v3 = vld [vmem:[%s1395_s0] ss:$12 sps:$4 sm:$0xff]  }
   0x2   :  { %130 = vmatprep.subr.bf16.mxu0 %v1033_v1  ;;  %973 = vmatpush3.bf16.msra.mxu1 %v1035_v2  ;;  %v1037_v4 = vld [vmem:[%s1395_s0 + $0x1c] ss:$12 sps:$4 sm:$0xff]   ;;  %v1039_v6 = vld [vmem:[%s1395_s0 + $0x20] ss:$12 sps:$4 sm:$0xff]   ;;  %v1040_v7 = vld [vmem:[%s1395_s0 + $0x18] ss:$12 sps:$4 sm:$0xff]  }
   0x3   :  { %162 = vmatprep.mubr.bf16.mxu0 %v1115_v5  ;;  %131 = vmatpush1.bf16.msra.mxu0 %v1036_v3  ;;  %v1041_v8 = vld [vmem:[%s1395_s0 + $0x34] ss:$12 sps:$4 sm:$0xff]   ;;  %v1043_v9 = vld [vmem:[%s1395_s0 + $0x38] ss:$12 sps:$4 sm:$0xff]   ;;  %vm118_vm2 = vcmask 1045504   ;;  %v1116_v10 = vmov 65535  }
   0x4   :  { %974 = vmatprep.subr.bf16.mxu1 %v1113_v0  ;;  %132 = vmatprep.subr.bf16.mxu0 %v1037_v4  ;;  %v119_v11 = vsel %vm117_vm0, 4294967295, %v1116_v10  ;;  %v1044_v12 = vld [vmem:[%s1395_s0 + $0x30] ss:$12 sps:$4 sm:$0xff]   ;;  %v1045_v13 = vld [vmem:[%s1395_s0 + $0x4c] ss:$12 sps:$4 sm:$0xff]   ;;  %vm113_vm3 = vcmask 613376  }
   0x5   :  { %1032 = vset.pattern.permute.xlu0 %v1115_v5  ;;  %v1047_v14 = vld [vmem:[%s1395_s0 + $0x50] ss:$12 sps:$4 sm:$0xff]   ;;  %v1178_v15 = vsel %vm118_vm2, %v119_v11, 0  ;;  %v1051_v17 = vld [vmem:[%s1395_s0 + $0x68] ss:$12 sps:$4 sm:$0x3f]  }
   0x6   :  { %975 = vmatpush3.bf16.msra.mxu1 %v1039_v6  ;;  %v1049_v16 = vld [vmem:[%s1395_s0 + $0x64] ss:$12 sps:$4 sm:$0x3f]   ;;  %v1048_v18 = vld [vmem:[%s1395_s0 + $0x48] ss:$12 sps:$4 sm:$0xff]   ;;  %v128_v21 = vand.u32 %v1051_v17, %v1178_v15  ;;  %vm810_vm4 = vcmask 256000  }
   0x7   :  { %133 = vmatpush1.bf16.msra.mxu0 %v1040_v7  ;;  %976 = vmatprep.subr.bf16.mxu1 %v1113_v0  ;;  %v1052_v19 = vld [vmem:[%s1395_s0 + $0x60] ss:$12 sps:$4 sm:$0x3f]   ;;  %v125_v20 = vand.u32 %v1049_v16, %v1178_v15  ;;  %v1055_v23 = vld [vmem:[%s1395_s0 + $0x7c] ss:$12 sps:$4 sm:$0xff]  }
   0x8   :  { %134 = vmatprep.subr.bf16.mxu0 %v1041_v8  ;;  %v122_v22 = vand.u32 %v1052_v19, %v1178_v15  ;;  %v1203_v24 = vld [vmem:[%s1396_s1] sm:$0x7]  ;;  %v1053_v26 = vld [vmem:[%s1395_s0 + $0x78] ss:$12 sps:$4 sm:$0xff]   ;;  %v1057_v29 = vld [vmem:[%s1395_s0 + $0x90] ss:$12 sps:$4 sm:$0xff]  }
   0x9   :  { %v1056_v25 = vld [vmem:[%s1395_s0 + $0x80] ss:$12 sps:$4 sm:$0xff]   ;;  %v1060_v28 = vld [vmem:[%s1395_s0 + $0x98] ss:$12 sps:$4 sm:$0xff]   ;;  %v1064_v31 = vld [vmem:[%s1395_s0 + $0xb0] ss:$12 sps:$4 sm:$0xff]  }
   0xa   :  { %977 = vmatpush3.bf16.msra.mxu1 %v1043_v9  ;;  %v1059_v27 = vld [vmem:[%s1395_s0 + $0x94] ss:$12 sps:$4 sm:$0xff]   ;;  %v1063_v30 = vld [vmem:[%s1395_s0 + $0xac] ss:$12 sps:$4 sm:$0xff]   ;;  %v1067_v33 = vld [vmem:[%s1395_s0 + $0xc4] ss:$12 sps:$4 sm:$0xff]  }
   0xb   :  { %135 = vmatpush1.bf16.msra.mxu0 %v1044_v12  ;;  %978 = vmatprep.subr.bf16.mxu1 %v1113_v0  ;;  %v1061_v32 = vld [vmem:[%s1395_s0 + $0xa8] ss:$12 sps:$4 sm:$0xff]   ;;  %v1069_v36 = vld [vmem:[%s1395_s0 + $0xd8] ss:$12 sps:$4 sm:$0x3f]  }
   0xc   :  { %136 = vmatprep.subr.bf16.mxu0 %v1045_v13  ;;  %v1071_v34 = vld [vmem:[%s1395_s0 + $0xdc] ss:$12 sps:$4 sm:$0x3f]   ;;  %v1072_v37 = vld [vmem:[%s1395_s0 + $0xe0] ss:$12 sps:$4 sm:$0x3f]   ;;  %v310_v41 = vand.u32 %v1069_v36, %v1178_v15 }
   0xd   :  { %v1068_v35 = vld [vmem:[%s1395_s0 + $0xc8] ss:$12 sps:$4 sm:$0xff]   ;;  %v1065_v38 = vld [vmem:[%s1395_s0 + $0xc0] ss:$12 sps:$4 sm:$0xff]   ;;  %v313_v39 = vand.u32 %v1071_v34, %v1178_v15  ;;  %v316_v40 = vand.u32 %v1072_v37, %v1178_v15  ;;  %v1076_v43 = vld [vmem:[%s1395_s0 + $0xf8] ss:$12 sps:$4 sm:$0xff]  }
   0xe   :  { %979 = vmatpush3.bf16.msra.mxu1 %v1047_v14  ;;  %v1075_v42 = vld [vmem:[%s1395_s0 + $0xf4] ss:$12 sps:$4 sm:$0xff]   ;;  %v1073_v44 = vld [vmem:[%s1395_s0 + $0xf0] ss:$12 sps:$4 sm:$0xff]   ;;  %v1079_v45 = vld [vmem:[%s1395_s0 + $0x10c] ss:$12 sps:$4 sm:$0xff]  }
   0xf   :  { %137 = vmatpush1.bf16.msra.mxu0 %v1048_v18  ;;  %980 = vmatprep.subr.bf16.mxu1 %v1113_v0  ;;  %v1080_v46 = vld [vmem:[%s1395_s0 + $0x110] ss:$12 sps:$4 sm:$0xff]   ;;  %v1077_v47 = vld [vmem:[%s1395_s0 + $0x108] ss:$12 sps:$4 sm:$0xff]   ;;  %v784_v50 = vld [vmem:[%s1397_s2] sm:$0x3f] }
  0x10   :  { %138 = vmatprep.subr.bf16.mxu0 %v125_v20  ;;  %v1083_v48 = vld [vmem:[%s1395_s0 + $0x124] ss:$12 sps:$4 sm:$0xff]   ;;  %v1084_v49 = vld [vmem:[%s1395_s0 + $0x128] ss:$12 sps:$4 sm:$0xff]   ;;  %v1081_v51 = vld [vmem:[%s1395_s0 + $0x120] ss:$12 sps:$4 sm:$0xff]   ;;  %787 = vperm.xlu0 %1032, %v784_v50  }
  0x11   :  { %v1087_v52 = vld [vmem:[%s1395_s0 + $0x13c] ss:$12 sps:$4 sm:$0xff]   ;;  %v1091_v53 = vld [vmem:[%s1395_s0 + $0x154] ss:$12 sps:$4 sm:$0x3f]  }
  0x12   :  { %981 = vmatpush3.bf16.msra.mxu1 %v128_v21  ;;  %v1088_v54 = vld [vmem:[%s1395_s0 + $0x140] ss:$12 sps:$4 sm:$0xff]   ;;  %v1092_v55 = vld [vmem:[%s1395_s0 + $0x158] ss:$12 sps:$4 sm:$0x3f]   ;;  %v501_v58 = vand.u32 %v1091_v53, %v1178_v15 }
  0x13   :  { %139 = vmatpush1.bf16.msra.mxu0 %v122_v22  ;;  %986 = vmatprep.subr.bf16.mxu1 %v1113_v0  ;;  %v1085_v56 = vld [vmem:[%s1395_s0 + $0x138] ss:$12 sps:$4 sm:$0xff]   ;;  %v1089_v57 = vld [vmem:[%s1395_s0 + $0x150] ss:$12 sps:$4 sm:$0x3f]   ;;  %v504_v59 = vand.u32 %v1092_v55, %v1178_v15 }
  0x14   :  { %318 = vmatprep.subr.bf16.mxu0 %v1055_v23  ;;  %v498_v60 = vand.u32 %v1089_v57, %v1178_v15  ;;  %v1095_v61 = vld [vmem:[%s1395_s0 + $0x16c] ss:$12 sps:$4 sm:$0xff]   ;;  %v1096_v62 = vld [vmem:[%s1395_s0 + $0x170] ss:$12 sps:$4 sm:$0xff]   ;;  %v1093_v63 = vld [vmem:[%s1395_s0 + $0x168] ss:$12 sps:$4 sm:$0xff]  }
  0x15   :  { %983 = vmatmul.mubr.msk.bf16.vlgmr.msra.gmra.mrb[0].mxu1 %vm113_vm3, %v1203_v24  ;;  %v1099_v1 = vld [vmem:[%s1395_s0 + $0x184] ss:$12 sps:$4 sm:$0xff]   ;;  %v1100_v2 = vld [vmem:[%s1395_s0 + $0x188] ss:$12 sps:$4 sm:$0xff]   ;;  %v1097_v3 = vld [vmem:[%s1395_s0 + $0x180] ss:$12 sps:$4 sm:$0xff]  }
  0x16   :  { %831 = vmatmul.mubr.msk.bf16.vlgmr.msra.gmra.mrb[0].mxu0 %vm113_vm3, %v1203_v24  ;;  %987 = vmatpush3.bf16.msra.mxu1 %v1056_v25  ;;  %v1103_v4 = vld [vmem:[%s1395_s0 + $0x19c] ss:$12 sps:$4 sm:$0xff]   ;;  %v1104_v6 = vld [vmem:[%s1395_s0 + $0x1a0] ss:$12 sps:$4 sm:$0xff]   ;;  %v1101_v7 = vld [vmem:[%s1395_s0 + $0x198] ss:$12 sps:$4 sm:$0xff]  }
  0x17   :  { %319 = vmatpush1.bf16.msra.mxu0 %v1053_v26  ;;  %988 = vmatprep.subr.bf16.mxu1 %v1113_v0  ;;  %v1107_v8 = vld [vmem:[%s1395_s0 + $0x1b4] ss:$12 sps:$4 sm:$0xff]   ;;  %v1108_v9 = vld [vmem:[%s1395_s0 + $0x1b8] ss:$12 sps:$4 sm:$0xff]   ;;  %v1105_v11 = vld [vmem:[%s1395_s0 + $0x1b0] ss:$12 sps:$4 sm:$0xff]  }
  0x18   :  { %320 = vmatprep.subr.bf16.mxu0 %v1059_v27  ;;  %996 = vmatprep.mubr.msk.bf16.mxu1 %vm1114_vm1, %v1113_v0  ;;  %v1112_v10 = vld [vmem:[%s1395_s0 + $0x1d0] ss:$12 sps:$4 sm:$0x3f]   ;;  %v1109_v12 = vld [vmem:[%s1395_s0 + $0x1c8] ss:$12 sps:$4 sm:$0x3f]  }
  0x19   :  { %350 = vmatprep.mubr.bf16.mxu0 %v1115_v5  ;;  %v692_v14 = vand.u32 %v1112_v10, %v1178_v15  ;;  %v686_v16 = vand.u32 %v1109_v12, %v1178_v15 }
  0x1a   :  { %989 = vmatpush3.bf16.msra.mxu1 %v1060_v28 }
  0x1b   :  { %321 = vmatpush1.bf16.msra.mxu0 %v1057_v29  ;;  %990 = vmatprep.subr.bf16.mxu1 %v1113_v0 }
  0x1c   :  { %322 = vmatprep.subr.bf16.mxu0 %v1063_v30 }
  0x1e   :  { %991 = vmatpush3.bf16.msra.mxu1 %v1064_v31 }
  0x1f   :  { %323 = vmatpush1.bf16.msra.mxu0 %v1061_v32  ;;  %992 = vmatprep.subr.bf16.mxu1 %v1113_v0 }
  0x20   :  { %324 = vmatprep.subr.bf16.mxu0 %v1067_v33 }
  0x22   :  { %993 = vmatpush3.bf16.msra.mxu1 %v1068_v35 }
  0x23   :  { %325 = vmatpush1.bf16.msra.mxu0 %v1065_v38  ;;  %994 = vmatprep.subr.bf16.mxu1 %v1113_v0 }
  0x24   :  { %326 = vmatprep.subr.bf16.mxu0 %v313_v39 }
  0x26   :  { %995 = vmatpush3.bf16.msra.mxu1 %v316_v40 }
  0x27   :  { %327 = vmatpush1.bf16.msra.mxu0 %v310_v41  ;;  %1000 = vmatprep.subr.bf16.mxu1 %v1113_v0 }
  0x28   :  { %506 = vmatprep.subr.bf16.mxu0 %v1075_v42 }
  0x29   :  { %997 = vmatmul.mubr.msk.bf16.vlgmr.msra.gmra.mrb[4].mxu1 %vm113_vm3, %v1203_v24 }
  0x2a   :  { %868 = vmatmul.mubr.msk.bf16.vlgmr.msra.gmra.mrb[4].mxu0 %vm113_vm3, %v1203_v24  ;;  %1001 = vmatpush3.bf16.msra.mxu1 %v1076_v43 }
  0x2b   :  { %507 = vmatpush1.bf16.msra.mxu0 %v1073_v44  ;;  %1002 = vmatprep.subr.bf16.mxu1 %v1113_v0 }
  0x2c   :  { %508 = vmatprep.subr.bf16.mxu0 %v1079_v45  ;;  %1010 = vmatprep.mubr.msk.bf16.mxu1 %vm1114_vm1, %v1113_v0 }
  0x2d   :  { %538 = vmatprep.mubr.bf16.mxu0 %v1115_v5 }
  0x2e   :  { %1003 = vmatpush3.bf16.msra.mxu1 %v1080_v46 }
  0x2f   :  { %509 = vmatpush1.bf16.msra.mxu0 %v1077_v47  ;;  %1004 = vmatprep.subr.bf16.mxu1 %v1113_v0 }
  0x30   :  { %510 = vmatprep.subr.bf16.mxu0 %v1083_v48 }
  0x32   :  { %1005 = vmatpush3.bf16.msra.mxu1 %v1084_v49 }
  0x33   :  { %511 = vmatpush1.bf16.msra.mxu0 %v1081_v51  ;;  %1006 = vmatprep.subr.bf16.mxu1 %v1113_v0 }
  0x34   :  { %512 = vmatprep.subr.bf16.mxu0 %v1087_v52 }
  0x36   :  { %1007 = vmatpush3.bf16.msra.mxu1 %v1088_v54 }
  0x37   :  { %513 = vmatpush1.bf16.msra.mxu0 %v1085_v56  ;;  %1008 = vmatprep.subr.bf16.mxu1 %v1113_v0 }
  0x38   :  { %514 = vmatprep.subr.bf16.mxu0 %v501_v58 }
  0x3a   :  { %1009 = vmatpush3.bf16.msra.mxu1 %v504_v59 }
  0x3b   :  { %515 = vmatpush1.bf16.msra.mxu0 %v498_v60  ;;  %1014 = vmatprep.subr.bf16.mxu1 %v1113_v0 }
  0x3c   :  { %694 = vmatprep.subr.bf16.mxu0 %v1095_v61 }
  0x3d   :  { %1011 = vmatmul.mubr.msk.bf16.vlgmr.msra.gmra.mrb[8].mxu1 %vm113_vm3, %v1203_v24 }
  0x3e   :  { %905 = vmatmul.mubr.msk.bf16.vlgmr.msra.gmra.mrb[8].mxu0 %vm113_vm3, %v1203_v24  ;;  %1015 = vmatpush3.bf16.msra.mxu1 %v1096_v62 }
  0x3f   :  { %695 = vmatpush1.bf16.msra.mxu0 %v1093_v63  ;;  %1016 = vmatprep.subr.bf16.mxu1 %v1113_v0 }
  0x40   :  { %696 = vmatprep.subr.bf16.mxu0 %v1099_v1  ;;  %1024 = vmatprep.mubr.msk.bf16.mxu1 %vm1114_vm1, %v1113_v0 }
  0x41   :  { %726 = vmatprep.mubr.bf16.mxu0 %v1115_v5  ;;  %v1111_v5 = vld [vmem:[%s1395_s0 + $0x1cc] ss:$12 sps:$4 sm:$0x3f]  }
  0x42   :  { %1017 = vmatpush3.bf16.msra.mxu1 %v1100_v2  ;;  %v689_v13 = vand.u32 %v1111_v5, %v1178_v15 }
  0x43   :  { %697 = vmatpush1.bf16.msra.mxu0 %v1097_v3  ;;  %1018 = vmatprep.subr.bf16.mxu1 %v1113_v0 }
  0x44   :  { %698 = vmatprep.subr.bf16.mxu0 %v1103_v4 }
  0x46   :  { %1019 = vmatpush3.bf16.msra.mxu1 %v1104_v6 }
  0x47   :  { %699 = vmatpush1.bf16.msra.mxu0 %v1101_v7  ;;  %1020 = vmatprep.subr.bf16.mxu1 %v1113_v0 }
  0x48   :  { %700 = vmatprep.subr.bf16.mxu0 %v1107_v8 }
  0x4a   :  { %1021 = vmatpush3.bf16.msra.mxu1 %v1108_v9 }
  0x4b   :  { %701 = vmatpush1.bf16.msra.mxu0 %v1105_v11  ;;  %1022 = vmatprep.subr.bf16.mxu1 %v1113_v0 }
  0x4c   :  { %702 = vmatprep.subr.bf16.mxu0 %v689_v13 }
  0x4e   :  { %1023 = vmatpush3.bf16.msra.mxu1 %v692_v14 }
  0x4f   :  { %703 = vmatpush1.bf16.msra.mxu0 %v686_v16 }
  0x51   :  { %1025 = vmatmul.mubr.msk.bf16.vlgmr.msra.gmra.mrb[12].mxu1 %vm113_vm3, %v1203_v24 }
  0x52   :  { %942 = vmatmul.mubr.msk.bf16.vlgmr.msra.gmra.mrb[12].mxu0 %vm113_vm3, %v1203_v24 }
  0x8f   :  { %v788_v43 = vpop.permute.xlu0 %787 }
  0xe8   :  { %v205_v17 = vpop.f32.mrb[0].mxu1 }
  0xe9   :  { %v164_v18 = vpop.f32.mrb[0].mxu0  ;;  %v984_v19 = vpop.f32.mrb[1].mxu1 }
  0xea   :  { %v166_v20 = vpop.f32.mrb[1].mxu0  ;;  %v208_v21 = vpop.f32.mrb[2].mxu1 }
  0xeb   :  { %v168_v22 = vpop.f32.mrb[2].mxu0  ;;  %v985_v23 = vpop.f32.mrb[3].mxu1 }
  0xec   :  { %v169_v25 = vpop.f32.mrb[3].mxu0 }
  0xfc   :  { %v393_v0 = vpop.f32.mrb[4].mxu1 }
  0xfd   :  { %v777_v26 = vmax.f32 %v205_v17, %v393_v0  ;;  %v352_v15 = vpop.f32.mrb[4].mxu0  ;;  %v998_v27 = vpop.f32.mrb[5].mxu1 }
  0xfe   :  { %v775_v28 = vmax.f32 %v164_v18, %v352_v15  ;;  %v354_v29 = vpop.f32.mrb[5].mxu0  ;;  %v396_v30 = vpop.f32.mrb[6].mxu1 }
  0xff   :  { %v776_v31 = vmax.f32 %v166_v20, %v354_v29  ;;  %v356_v32 = vpop.f32.mrb[6].mxu0  ;;  %v999_v33 = vpop.f32.mrb[7].mxu1 }
 0x100   :  { %v357_v34 = vpop.f32.mrb[7].mxu0 }
 0x110   :  { %v581_v24 = vpop.f32.mrb[8].mxu1 }
 0x111   :  { %v540_v35 = vpop.f32.mrb[8].mxu0  ;;  %v1012_v36 = vpop.f32.mrb[9].mxu1 }
 0x112   :  { %v542_v37 = vpop.f32.mrb[9].mxu0  ;;  %v584_v38 = vpop.f32.mrb[10].mxu1 }
 0x113   :  { %v544_v39 = vpop.f32.mrb[10].mxu0  ;;  %v1013_v40 = vpop.f32.mrb[11].mxu1 }
 0x114   :  { %v545_v41 = vpop.f32.mrb[11].mxu0 }
 0x124   :  { %v769_v42 = vpop.f32.mrb[12].mxu1 }
 0x125   :  { %v780_v44 = vmax.f32 %v581_v24, %v769_v42  ;;  %v728_v45 = vpop.f32.mrb[12].mxu0  ;;  %v1026_v46 = vpop.f32.mrb[13].mxu1 }
 0x126   :  { %v778_v47 = vmax.f32 %v540_v35, %v728_v45  ;;  %v730_v48 = vpop.f32.mrb[13].mxu0  ;;  %v772_v49 = vpop.f32.mrb[14].mxu1 }
 0x127   :  { %v783_v50 = vmax.f32 %v777_v26, %v780_v44  ;;  %v779_v51 = vmax.f32 %v542_v37, %v730_v48  ;;  %v732_v52 = vpop.f32.mrb[14].mxu0  ;;  %v1027_v53 = vpop.f32.mrb[15].mxu1 }
 0x128   :  { %v781_v54 = vmax.f32 %v775_v28, %v778_v47  ;;  %v733_v55 = vpop.f32.mrb[15].mxu0 }
 0x129   :  { %v782_v56 = vmax.f32 %v776_v31, %v779_v51  ;;  %v792_v57 = vadd.f32 %v788_v43, %v783_v50 }
 0x12a   :  { %v790_v58 = vadd.f32 %v788_v43, %v781_v54 }
 0x12b   :  { %v791_v59 = vadd.f32 %v788_v43, %v782_v56  ;;  %v795_v60 = vmax.f32 %v792_v57, 0.0 }
 0x12c   :  { %v793_v61 = vmax.f32 %v790_v58, 0.0 }
 0x12d   :  { %v794_v62 = vmax.f32 %v791_v59, 0.0  ;;  %v947_v63 = vpack.c.bf16 %v795_v60, %v795_v60 }
 0x12f   :  { %v946_v1 = vpack.c.bf16 %v794_v62, %v793_v61  ;;  %811 = vst.msk [vmem:[%s1398_s3 + $0x8] sm:$0x7] %vm810_vm4, %v947_v63 }
 0x131   :  { %809 = vst [vmem:[%s1398_s3] sm:$0x77] %v946_v1 }

// kernel: mnistm_classifier_forward.4
= control target key start
LH: loop header
LB: loop body
LE: loop exit
PB: predicated region body
PF: predicated region fallthrough
CT: control target
= control target key end

     0   :  { %v703_v0 = vmov 0   ;;  %vm102_vm0 = vcmask 179200   ;;  %vm106_vm1 = vcmask 1042432   ;;  %vm544_vm2 = vcmask 257024   ;;  %s917_s0 = inlined_call_operand.vmem [shape: bf16[4,150,32], index: 0, kind: input, shape index: {}]   ;;  %s918_s1 = inlined_call_operand.vmem [shape: bf16[16,150], index: 1, kind: input, shape index: {}]   ;;  %s919_s2 = inlined_call_operand.vmem [shape: f32[16,1], index: 2, kind: input, shape index: {}]   ;;  %s920_s3 = inlined_call_operand.vmem [shape: bf16[16,32], index: 3, kind: output, shape index: {}]  }
   0x1   :  { %110 = vmatprep.subr.bf16.mxu0 %v703_v0  ;;  %231 = vmatprep.subr.bf16.mxu1 %v703_v0  ;;  %v660_v1 = vld [vmem:[%s917_s0] sm:$0xff]   ;;  %v661_v2 = vld [vmem:[%s917_s0 + $0x4c] sm:$0xff]   ;;  %v663_v4 = vld [vmem:[%s917_s0 + $0x54] sm:$0xff]  }
   0x2   :  { %659 = vset.pattern.permute.xlu0 %v703_v0  ;;  %111 = vmatpush1.bf16.msra.mxu0 %v660_v1  ;;  %v662_v3 = vld [vmem:[%s917_s0 + $0x8] sm:$0xff]   ;;  %v664_v5 = vld [vmem:[%s917_s0 + $0x10] sm:$0xff]   ;;  %v665_v6 = vld [vmem:[%s917_s0 + $0x5c] sm:$0xff]  }
   0x3   :  { %232 = vmatpush1.bf16.msra.mxu1 %v661_v2  ;;  %112 = vmatprep.subr.bf16.mxu0 %v703_v0  ;;  %v666_v7 = vld [vmem:[%s917_s0 + $0x18] sm:$0xff]   ;;  %v667_v8 = vld [vmem:[%s917_s0 + $0x64] sm:$0xff]   ;;  %v669_v10 = vld [vmem:[%s917_s0 + $0x6c] sm:$0xff]  }
   0x4   :  { %233 = vmatprep.subr.bf16.mxu1 %v703_v0  ;;  %v668_v9 = vld [vmem:[%s917_s0 + $0x20] sm:$0xff]   ;;  %v670_v11 = vld [vmem:[%s917_s0 + $0x28] sm:$0xff]   ;;  %v671_v12 = vld [vmem:[%s917_s0 + $0x74] sm:$0xff]  }
   0x5   :  { %v680_v13 = vld [vmem:[%s918_s1 + $0x4] ss:$8 sps:$4 sm:$0xff]   ;;  %v672_v14 = vld [vmem:[%s917_s0 + $0x30] sm:$0xff]   ;;  %v673_v15 = vld [vmem:[%s917_s0 + $0x7c] sm:$0xff]  }
   0x6   :  { %113 = vmatpush1.bf16.msra.mxu0 %v662_v3  ;;  %563 = vmatprep.mubr.msk.bf16.mxu0 %vm102_vm0, %v680_v13  ;;  %v674_v16 = vld [vmem:[%s917_s0 + $0x38] sm:$0xff]   ;;  %v675_v17 = vld [vmem:[%s917_s0 + $0x84] sm:$0xff]   ;;  %v679_v20 = vld [vmem:[%s917_s0 + $0x94] ss:$0 sps:$4 sm:$0x77]  }
   0x7   :  { %234 = vmatpush1.bf16.msra.mxu1 %v663_v4  ;;  %114 = vmatprep.subr.bf16.mxu0 %v703_v0  ;;  %v678_v18 = vld [vmem:[%s917_s0 + $0x48] ss:$0 sps:$4 sm:$0x77]   ;;  %v676_v19 = vld [vmem:[%s917_s0 + $0x40] sm:$0xff]   ;;  %v677_v21 = vld [vmem:[%s917_s0 + $0x8c] sm:$0xff]   ;;  %v229_v23 = vsel %vm106_vm1, %v679_v20, 0 }
   0x8   :  { %235 = vmatprep.subr.bf16.mxu1 %v703_v0  ;;  %593 = vmatprep.mubr.msk.bf16.mxu1 %vm102_vm0, %v680_v13  ;;  %v108_v22 = vsel %vm106_vm1, %v678_v18, 0  ;;  %v815_v24 = vld [vmem:[%s918_s1] ss:$8 sps:$4 sm:$0xff]   ;;  %v683_v25 = vld [vmem:[%s917_s0 + $0x98] sm:$0xff]   ;;  %v686_v30 = vld [vmem:[%s917_s0 + $0xec] sm:$0xff]  }
   0x9   :  { %v684_v26 = vld [vmem:[%s917_s0 + $0xe4] sm:$0xff]   ;;  %v688_v32 = vld [vmem:[%s917_s0 + $0xf4] sm:$0xff]   ;;  %v690_v34 = vld [vmem:[%s917_s0 + $0xfc] sm:$0xff]  }
   0xa   :  { %115 = vmatpush1.bf16.msra.mxu0 %v664_v5  ;;  %v520_v27 = vld [vmem:[%s919_s2] sm:$0xff]  ;;  %v521_v29 = vld [vmem:[%s919_s2 + $0x8] sm:$0xff]  ;;  %v689_v33 = vld [vmem:[%s917_s0 + $0xb0] sm:$0xff]  }
   0xb   :  { %236 = vmatpush1.bf16.msra.mxu1 %v665_v6  ;;  %116 = vmatprep.subr.bf16.mxu0 %v703_v0  ;;  %v685_v28 = vld [vmem:[%s917_s0 + $0xa0] sm:$0xff]   ;;  %v687_v31 = vld [vmem:[%s917_s0 + $0xa8] sm:$0xff]   ;;  %v691_v35 = vld [vmem:[%s917_s0 + $0xb8] sm:$0xff]  }
   0xc   :  { %237 = vmatprep.subr.bf16.mxu1 %v703_v0  ;;  %524 = vperm.xlu0 %659, %v520_v27   ;;  %v692_v36 = vld [vmem:[%s917_s0 + $0x104] sm:$0xff]   ;;  %v694_v38 = vld [vmem:[%s917_s0 + $0x10c] sm:$0xff]   ;;  %v696_v40 = vld [vmem:[%s917_s0 + $0x114] sm:$0xff]  }
   0xd   :  { %v693_v37 = vld [vmem:[%s917_s0 + $0xc0] sm:$0xff]   ;;  %v695_v39 = vld [vmem:[%s917_s0 + $0xc8] sm:$0xff]   ;;  %v697_v41 = vld [vmem:[%s917_s0 + $0xd0] sm:$0xff]  }
   0xe   :  { %117 = vmatpush1.bf16.msra.mxu0 %v666_v7  ;;  %v698_v42 = vld [vmem:[%s917_s0 + $0x11c] sm:$0xff]   ;;  %v700_v44 = vld [vmem:[%s917_s0 + $0x124] sm:$0xff]   ;;  %v702_v46 = vld [vmem:[%s917_s0 + $0x12c] ss:$0 sps:$4 sm:$0x77]  }
   0xf   :  { %238 = vmatpush1.bf16.msra.mxu1 %v667_v8  ;;  %118 = vmatprep.subr.bf16.mxu0 %v703_v0  ;;  %v699_v43 = vld [vmem:[%s917_s0 + $0xd8] sm:$0xff]   ;;  %v701_v45 = vld [vmem:[%s917_s0 + $0xe0] ss:$0 sps:$4 sm:$0x77]   ;;  %v471_v48 = vsel %vm106_vm1, %v702_v46, 0 }
  0x10   :  { %239 = vmatprep.subr.bf16.mxu1 %v703_v0  ;;  %529 = vperm.xlu0 %659, %v521_v29   ;;  %v350_v47 = vsel %vm106_vm1, %v701_v45, 0 }
  0x12   :  { %119 = vmatpush1.bf16.msra.mxu0 %v668_v9 }
  0x13   :  { %240 = vmatpush1.bf16.msra.mxu1 %v669_v10  ;;  %120 = vmatprep.subr.bf16.mxu0 %v703_v0 }
  0x14   :  { %241 = vmatprep.subr.bf16.mxu1 %v703_v0 }
  0x16   :  { %121 = vmatpush1.bf16.msra.mxu0 %v670_v11 }
  0x17   :  { %242 = vmatpush1.bf16.msra.mxu1 %v671_v12  ;;  %122 = vmatprep.subr.bf16.mxu0 %v703_v0 }
  0x18   :  { %243 = vmatprep.subr.bf16.mxu1 %v703_v0 }
  0x1a   :  { %123 = vmatpush1.bf16.msra.mxu0 %v672_v14 }
  0x1b   :  { %244 = vmatpush1.bf16.msra.mxu1 %v673_v15  ;;  %124 = vmatprep.subr.bf16.mxu0 %v703_v0 }
  0x1c   :  { %245 = vmatprep.subr.bf16.mxu1 %v703_v0 }
  0x1e   :  { %125 = vmatpush1.bf16.msra.mxu0 %v674_v16 }
  0x1f   :  { %246 = vmatpush1.bf16.msra.mxu1 %v675_v17  ;;  %126 = vmatprep.subr.bf16.mxu0 %v703_v0 }
  0x20   :  { %247 = vmatprep.subr.bf16.mxu1 %v703_v0 }
  0x22   :  { %127 = vmatpush1.bf16.msra.mxu0 %v676_v19 }
  0x23   :  { %248 = vmatpush1.bf16.msra.mxu1 %v677_v21  ;;  %128 = vmatprep.subr.bf16.mxu0 %v703_v0 }
  0x24   :  { %249 = vmatprep.subr.bf16.mxu1 %v703_v0 }
  0x26   :  { %129 = vmatpush1.bf16.msra.mxu0 %v108_v22 }
  0x27   :  { %250 = vmatpush1.bf16.msra.mxu1 %v229_v23  ;;  %352 = vmatprep.subr.bf16.mxu0 %v703_v0 }
  0x28   :  { %473 = vmatprep.subr.bf16.mxu1 %v703_v0 }
  0x29   :  { %143 = vmatmul.mubr.bf16.vlgmr.msra.gmra.mrb[0].mxu0 %v815_v24 }
  0x2a   :  { %264 = vmatmul.mubr.bf16.vlgmr.msra.gmra.mrb[0].mxu1 %v815_v24  ;;  %353 = vmatpush1.bf16.msra.mxu0 %v683_v25 }
  0x2b   :  { %474 = vmatpush1.bf16.msra.mxu1 %v684_v26  ;;  %354 = vmatprep.subr.bf16.mxu0 %v703_v0 }
  0x2c   :  { %475 = vmatprep.subr.bf16.mxu1 %v703_v0  ;;  %623 = vmatprep.mubr.msk.bf16.mxu0 %vm102_vm0, %v680_v13 }
  0x2d   :  { %653 = vmatprep.mubr.msk.bf16.mxu1 %vm102_vm0, %v680_v13 }
  0x2e   :  { %355 = vmatpush1.bf16.msra.mxu0 %v685_v28 }
  0x2f   :  { %476 = vmatpush1.bf16.msra.mxu1 %v686_v30  ;;  %356 = vmatprep.subr.bf16.mxu0 %v703_v0 }
  0x30   :  { %477 = vmatprep.subr.bf16.mxu1 %v703_v0 }
  0x32   :  { %357 = vmatpush1.bf16.msra.mxu0 %v687_v31 }
  0x33   :  { %478 = vmatpush1.bf16.msra.mxu1 %v688_v32  ;;  %358 = vmatprep.subr.bf16.mxu0 %v703_v0 }
  0x34   :  { %479 = vmatprep.subr.bf16.mxu1 %v703_v0 }
  0x36   :  { %359 = vmatpush1.bf16.msra.mxu0 %v689_v33 }
  0x37   :  { %480 = vmatpush1.bf16.msra.mxu1 %v690_v34  ;;  %360 = vmatprep.subr.bf16.mxu0 %v703_v0 }
  0x38   :  { %481 = vmatprep.subr.bf16.mxu1 %v703_v0 }
  0x3a   :  { %361 = vmatpush1.bf16.msra.mxu0 %v691_v35 }
  0x3b   :  { %482 = vmatpush1.bf16.msra.mxu1 %v692_v36  ;;  %362 = vmatprep.subr.bf16.mxu0 %v703_v0 }
  0x3c   :  { %483 = vmatprep.subr.bf16.mxu1 %v703_v0 }
  0x3e   :  { %363 = vmatpush1.bf16.msra.mxu0 %v693_v37 }
  0x3f   :  { %484 = vmatpush1.bf16.msra.mxu1 %v694_v38  ;;  %364 = vmatprep.subr.bf16.mxu0 %v703_v0 }
  0x40   :  { %485 = vmatprep.subr.bf16.mxu1 %v703_v0 }
  0x42   :  { %365 = vmatpush1.bf16.msra.mxu0 %v695_v39 }
  0x43   :  { %486 = vmatpush1.bf16.msra.mxu1 %v696_v40  ;;  %366 = vmatprep.subr.bf16.mxu0 %v703_v0 }
  0x44   :  { %487 = vmatprep.subr.bf16.mxu1 %v703_v0 }
  0x46   :  { %367 = vmatpush1.bf16.msra.mxu0 %v697_v41 }
  0x47   :  { %488 = vmatpush1.bf16.msra.mxu1 %v698_v42  ;;  %368 = vmatprep.subr.bf16.mxu0 %v703_v0 }
  0x48   :  { %489 = vmatprep.subr.bf16.mxu1 %v703_v0 }
  0x4a   :  { %369 = vmatpush1.bf16.msra.mxu0 %v699_v43 }
  0x4b   :  { %490 = vmatpush1.bf16.msra.mxu1 %v700_v44  ;;  %370 = vmatprep.subr.bf16.mxu0 %v703_v0 }
  0x4c   :  { %491 = vmatprep.subr.bf16.mxu1 %v703_v0 }
  0x4e   :  { %371 = vmatpush1.bf16.msra.mxu0 %v350_v47 }
  0x4f   :  { %492 = vmatpush1.bf16.msra.mxu1 %v471_v48 }
  0x51   :  { %385 = vmatmul.mubr.bf16.vlgmr.msra.gmra.mrb[4].mxu0 %v815_v24 }
  0x52   :  { %506 = vmatmul.mubr.bf16.vlgmr.msra.gmra.mrb[4].mxu1 %v815_v24 }
  0x8b   :  { %v525_v59 = vpop.permute.xlu0 %524 }
  0x8f   :  { %v530_v9 = vpop.permute.xlu0 %529 }
  0xfc   :  { %v144_v49 = vpop.f32.mrb[0].mxu0 }
  0xfd   :  { %v265_v50 = vpop.f32.mrb[0].mxu1  ;;  %v146_v51 = vpop.f32.mrb[1].mxu0 }
  0xfe   :  { %v514_v52 = vmax.f32 %v144_v49, %v265_v50  ;;  %v267_v53 = vpop.f32.mrb[1].mxu1  ;;  %v147_v54 = vpop.f32.mrb[2].mxu0 }
  0xff   :  { %v268_v55 = vpop.f32.mrb[2].mxu1  ;;  %v149_v56 = vpop.f32.mrb[3].mxu0 }
 0x100   :  { %v515_v57 = vmax.f32 %v147_v54, %v268_v55  ;;  %v270_v58 = vpop.f32.mrb[3].mxu1 }
 0x124   :  { %v386_v60 = vpop.f32.mrb[4].mxu0 }
 0x125   :  { %v507_v61 = vpop.f32.mrb[4].mxu1  ;;  %v388_v62 = vpop.f32.mrb[5].mxu0 }
 0x126   :  { %v516_v63 = vmax.f32 %v386_v60, %v507_v61  ;;  %v509_v0 = vpop.f32.mrb[5].mxu1  ;;  %v389_v1 = vpop.f32.mrb[6].mxu0 }
 0x127   :  { %v510_v2 = vpop.f32.mrb[6].mxu1  ;;  %v391_v3 = vpop.f32.mrb[7].mxu0 }
 0x128   :  { %v518_v4 = vmax.f32 %v514_v52, %v516_v63  ;;  %v517_v5 = vmax.f32 %v389_v1, %v510_v2  ;;  %v512_v6 = vpop.f32.mrb[7].mxu1 }
 0x12a   :  { %v532_v7 = vadd.f32 %v525_v59, %v518_v4  ;;  %v519_v8 = vmax.f32 %v515_v57, %v517_v5 }
 0x12c   :  { %v534_v10 = vmax.f32 %v532_v7, 0.0  ;;  %v533_v11 = vadd.f32 %v530_v9, %v519_v8 }
 0x12e   :  { %v656_v12 = vpack.c.bf16 %v534_v10, %v534_v10  ;;  %v535_v13 = vmax.f32 %v533_v11, 0.0 }
 0x130   :  { %545 = vst.msk [vmem:[%s920_s3] sm:$0xf] %vm544_vm2, %v656_v12  ;;  %v657_v14 = vpack.c.bf16 %v535_v13, %v535_v13 }
 0x132   :  { %546 = vst.msk [vmem:[%s920_s3 + $0x4] sm:$0xf] %vm544_vm2, %v657_v14 }

// kernel: mnistm_classifier_forward.5
= control target key start
LH: loop header
LB: loop body
LE: loop exit
PB: predicated region body
PF: predicated region fallthrough
CT: control target
= control target key end

     0   :  { %v600_v2 = vmov 0.0   ;;  %v80_v10 = vlaneseq  ;;  %v601_v14 = vmov 1966171168   ;;  %s766_s0 = inlined_call_operand.vmem [shape: bf16[2,256], index: 0, kind: input, shape index: {}]   ;;  %s767_s1 = inlined_call_operand.vmem [shape: bf16[256,128], index: 1, kind: input, shape index: {}]   ;;  %s768_s2 = inlined_call_operand.vmem [shape: f32[1,128], index: 2, kind: input, shape index: {}]   ;;  %s769_s3 = inlined_call_operand.vmem [shape: bf16[128,64], index: 3, kind: input, shape index: {}]   ;;  %s770_s4 = inlined_call_operand.vmem [shape: f32[1,64], index: 4, kind: input, shape index: {}]   ;;  %s771_s5 = inlined_call_operand.vmem [shape: bf16[64,10], index: 5, kind: input, shape index: {}]   ;;  %s772_s6 = inlined_call_operand.vmem [shape: f32[1,10], index: 6, kind: input, shape index: {}]   ;;  %s773_s7 = inlined_call_operand.hbm [shape: f32[2,10], index: 7, kind: output, shape index: {}]  }
   0x1   :  { %v548_v0 = vld [vmem:[%s767_s1 + $0x40] sm:$0xff]   ;;  %512 = vmatprep.subr.bf16.mxu1 %v600_v2  ;;  %v550_v3 = vld [vmem:[%s767_s1 + $0x48] sm:$0xff]   ;;  %v552_v5 = vld [vmem:[%s767_s1 + $0x50] sm:$0xff]   ;;  %v78_v15 = vunpack.c.l.s4 %v601_v14 }
   0x2   :  { %v549_v1 = vld [vmem:[%s767_s1] sm:$0xff]   ;;  %476 = vmatprep.subr.bf16.mxu0 %v548_v0  ;;  %v551_v4 = vld [vmem:[%s767_s1 + $0x8] sm:$0xff]   ;;  %v553_v6 = vld [vmem:[%s767_s1 + $0x10] sm:$0xff]   ;;  %v81_v16 = vshrl.u32 %v80_v10, 7 }
   0x3   :  { %477 = vmatpush3.bf16.msra.mxu0 %v549_v1  ;;  %v554_v7 = vld [vmem:[%s767_s1 + $0x58] sm:$0xff]   ;;  %v556_v9 = vld [vmem:[%s767_s1 + $0x60] sm:$0xff]   ;;  %v558_v12 = vld [vmem:[%s767_s1 + $0x68] sm:$0xff]   ;;  %v79_v20 = vunpack.c.0.s8 %v78_v15 }
   0x4   :  { %478 = vmatprep.subr.bf16.mxu0 %v550_v3  ;;  %v555_v8 = vld [vmem:[%s767_s1 + $0x18] sm:$0xff]   ;;  %v557_v11 = vld [vmem:[%s767_s1 + $0x20] sm:$0xff]   ;;  %v559_v18 = vld [vmem:[%s767_s1 + $0x28] sm:$0xff]  }
   0x5   :  { %v444_v13 = vld.sshfl [vmem:[%s766_s0] sm:$0x11 pattern:$0x75316420]  ;;  %v565_v21 = vld [vmem:[%s769_s3 + $0x8] sm:$0xff]   ;;  %v560_v22 = vld [vmem:[%s767_s1 + $0x70] sm:$0xff]   ;;  %v82_v24 = vsub.s32 %v79_v20, %v81_v16 }
   0x6   :  { %v564_v17 = vld [vmem:[%s769_s3] sm:$0xff]   ;;  %v76_v19 = vcombine.high %v444_v13, %v444_v13  ;;  %v561_v23 = vld [vmem:[%s767_s1 + $0x30] sm:$0xff]   ;;  %v562_v25 = vld [vmem:[%s767_s1 + $0x78] sm:$0xff]  }
   0x7   :  { %479 = vmatpush3.bf16.msra.mxu0 %v551_v4  ;;  %513 = vmatpush3.bf16.msra.mxu1 %v564_v17  ;;  %v566_v26 = vld [vmem:[%s769_s3 + $0x10] sm:$0xff]   ;;  %v563_v28 = vld [vmem:[%s767_s1 + $0x38] sm:$0xff]  }
   0x8   :  { %480 = vmatprep.subr.bf16.mxu0 %v552_v5  ;;  %514 = vmatprep.subr.bf16.mxu1 %v600_v2  ;;  %v90_v27 = vrot.slane %v76_v19, %v82_v24  ;;  %v567_v29 = vld [vmem:[%s769_s3 + $0x18] sm:$0xff]  }
   0xa   :  { %221 = vmatprep.mubr.bf16.mxu0 %v90_v27 }
   0xb   :  { %481 = vmatpush3.bf16.msra.mxu0 %v553_v6  ;;  %515 = vmatpush3.bf16.msra.mxu1 %v565_v21 }
   0xc   :  { %482 = vmatprep.subr.bf16.mxu0 %v554_v7  ;;  %516 = vmatprep.subr.bf16.mxu1 %v600_v2 }
   0xf   :  { %483 = vmatpush3.bf16.msra.mxu0 %v555_v8  ;;  %517 = vmatpush3.bf16.msra.mxu1 %v566_v26 }
  0x10   :  { %484 = vmatprep.subr.bf16.mxu0 %v556_v9 }
  0x13   :  { %485 = vmatpush3.bf16.msra.mxu0 %v557_v11 }
  0x14   :  { %486 = vmatprep.subr.bf16.mxu0 %v558_v12 }
  0x17   :  { %487 = vmatpush3.bf16.msra.mxu0 %v559_v18 }
  0x18   :  { %488 = vmatprep.subr.bf16.mxu0 %v560_v22 }
  0x1b   :  { %489 = vmatpush3.bf16.msra.mxu0 %v561_v23 }
  0x1c   :  { %12 = vsyncpa [#allocation3], 0  ;;  %490 = vmatprep.subr.bf16.mxu0 %v562_v25  ;;  %518 = vmatprep.subr.bf16.mxu1 %v600_v2  ;;  %v83_v30 = vrot.slane %v444_v13, %v82_v24  ;;  %v568_v31 = vld [vmem:[%s769_s3 + $0x20] sm:$0xff]   ;;  %v569_v32 = vld [vmem:[%s769_s3 + $0x28] sm:$0xff]   ;;  %vm602_vm0 = vmmov 0   ;;  %vm383_vm1 = vcmask 523264  }
  0x1d   :  { %519 = vmatpush3.bf16.msra.mxu1 %v567_v29  ;;  %v570_v33 = vld [vmem:[%s769_s3 + $0x30] sm:$0xff]   ;;  %v571_v34 = vld [vmem:[%s769_s3 + $0x38] sm:$0xff]   ;;  %528 = vmatprep.mubr.msk.bf16.mxu1 %vm602_vm0, %v600_v2  ;;  %v572_v35 = vld [vmem:[%s771_s5] sm:$0xff]   ;;  %s603_s14 = smov [#allocation2]   ;;  %vm427_vm2 = vcmask 74752  }
  0x1e   :  { %520 = vmatprep.subr.bf16.mxu1 %v600_v2  ;;  %v573_v36 = vld [vmem:[%s771_s5 + $0x8] sm:$0xff]   ;;  %v443_v38 = vld [vmem:[%s768_s2] ss:$0 sm:$0xff]  ;;  %v574_v46 = vld [vmem:[%s771_s5 + $0x10] sm:$0xff]  }
  0x1f   :  { %491 = vmatpush3.bf16.msra.mxu0 %v563_v28  ;;  %v575_v47 = vld [vmem:[%s771_s5 + $0x18] sm:$0xff]   ;;  %v461_v48 = vld [vmem:[%s770_s4] ss:$0 sm:$0xff]  ;;  %s435_s5 = sshll.u32 %s603_s14, 4  ;;  %s436_s5 = int_to_ptr.vmem [resolvable:$true] %s435_s5 }
  0x20   :  { %532 = vmatprep.subr.bf16.mxu0 %v600_v2  ;;  %v470_v56 = vld [vmem:[%s772_s6] ss:$0 sm:$0xff]  ;;  %s576_s4 = scalar_lea.vmem %s436_s5, 32  ;;  %p581_p1 = scmp.lt.s32.totalorder %s436_s5, %s436_s5 }
  0x21   :  { %521 = vmatpush3.bf16.msra.mxu1 %v568_v31  ;;  %p577_p0 = scmp.ne.s32.totalorder %s436_s5, %s576_s4  ;;  %p582_p2 = scmp.lt.s32.totalorder %s576_s4, %s576_s4 }
  0x22   :  { %222 = vmatmul.mubr.bf16.vlgmr.msra.gmra.mrb[0].mxu0 %v83_v30  ;;  %522 = vmatprep.subr.bf16.mxu1 %v600_v2 }
  0x23   :  { %540 = vmatprep.mubr.msk.bf16.mxu0 %vm602_vm0, %v600_v2  ;;  %533 = vmatpush3.bf16.msra.mxu0 %v572_v35  ;;  %p583_p3 = por %p582_p2, %p581_p1 }
  0x24   :  { %534 = vmatprep.subr.bf16.mxu0 %v600_v2 }
  0x25   :  { %523 = vmatpush3.bf16.msra.mxu1 %v569_v32  ;;  %p584_p4 = pnand %p583_p3, %p577_p0 }
  0x26   :  { %524 = vmatprep.subr.bf16.mxu1 %v600_v2 }
  0x27   :  { %535 = vmatpush3.bf16.msra.mxu0 %v573_v36 }
  0x28   :  { %536 = vmatprep.subr.bf16.mxu0 %v600_v2 }
  0x29   :  { %525 = vmatpush3.bf16.msra.mxu1 %v570_v33 }
  0x2a   :  { %526 = vmatprep.subr.bf16.mxu1 %v600_v2 }
  0x2b   :  { %537 = vmatpush3.bf16.msra.mxu0 %v574_v46 }
  0x2c   :  { %538 = vmatprep.subr.bf16.mxu0 %v600_v2 }
  0x2d   :  { %527 = vmatpush3.bf16.msra.mxu1 %v571_v34 }
  0x2f   :  { %539 = vmatpush3.bf16.msra.mxu0 %v575_v47 }
  0xf5   :  { %v492_v37 = vpop.f32.mrb[0].mxu0 }
  0xf6   :  { %v493_v39 = vpop.f32.mrb[1].mxu0 }
  0xf7   :  { %v494_v40 = vadd.f32 %v493_v39, %v492_v37  ;;  %v495_v41 = vpop.f32.mrb[2].mxu0 }
  0xf8   :  { %v496_v42 = vpop.f32.mrb[3].mxu0 }
  0xf9   :  { %v224_v43 = vadd.f32 %v494_v40, %v443_v38 }
  0xfb   :  { %v229_v44 = vmax.f32 %v224_v43, 0.0 }
  0xfd   :  { %v230_v45 = vpack.c.bf16 %v229_v44, %v229_v44 }
  0xff   :  { %529 = vmatmul.mubr.bf16.vlgmr.msra.gmra.mrb[0].mxu1 %v230_v45 }
 0x1d2   :  { %v336_v49 = vpop.f32.mrb[0].mxu1 }
 0x1d3   :  { %v337_v50 = vadd.f32 %v461_v48, %v336_v49  ;;  %v530_v51 = vpop.f32.mrb[1].mxu1 }
 0x1d4   :  { %v339_v52 = vpop.f32.mrb[2].mxu1 }
 0x1d5   :  { %v342_v53 = vmax.f32 %v337_v50, 0.0  ;;  %v531_v54 = vpop.f32.mrb[3].mxu1 }
 0x1d7   :  { %v343_v55 = vpack.c.bf16 %v342_v53, %v342_v53 }
 0x1d9   :  { %541 = vmatmul.mubr.msk.bf16.vlgmr.msra.gmra.mrb[4].mxu0 %vm383_vm1, %v343_v55 }
 0x2ac   :  { %v421_v57 = vpop.f32.mrb[4].mxu0 }
 0x2ad   :  { %v422_v58 = vadd.f32 %v470_v56, %v421_v57  ;;  %v542_v59 = vpop.f32.mrb[5].mxu0 }
 0x2ae   :  { %v424_v60 = vpop.f32.mrb[6].mxu0 }
 0x2af   :  { %v543_v61 = vpop.f32.mrb[7].mxu0  ;;  %428 = vst.msk [vmem:[#allocation2] sm:$0x3] %vm427_vm2, %v422_v58 }
 0x2b0   :  { %587 = shalt.err (!%p584_p4)
}
 0x2b1   :  { %s588_s6 = scalar_lea.hbm %s773_s7, 32 }
 0x2b2   :  { %p589_p5 = scmp.ne.s32.totalorder %s773_s7, %s588_s6  ;;  %p592_p6 = scmp.lt.u32.totalorder %s588_s6, %s773_s7 }
 0x2b4   :  { %p594_p7 = pnand %p592_p6, %p589_p5 }
 0x2b6   :  { %597 = shalt.err (!%p594_p7)
}
 0x2b7   :  { %438 = dma.vmem_to_hbm [thread:$0]  %s436_s5, 32, %s773_s7, [#allocation3]  }
 0x2b8   :  { %598 = dma.done.wait [#allocation3], 32  }
 0x2b9   :  { %599 = vsyncadd [#allocation3], 4294967264 }
 0x2ba   :  { %442 = vsyncpa [#allocation3], 1 }

</bundles_post_ra>
